<compile_context>
chip_gen: v7x
topology: tpu7x:2x2x1
jax: 0.10.0
libtpu: 0.0.40
codegen_flags: <defaults>
</compile_context>

<pallas_src>
import functools

import jax
import jax.numpy as jnp
from jax import lax
from jax.experimental import pallas as pl
from jax.experimental.pallas import tpu as pltpu


# ----------------------------- Pallas kernel ---------------------------------
def _make_gru_kernel(B, T, IN, VOCAB, F, H, O):
    """Whole-model kernel: embedding lookup + GRU recurrence + output linear."""
    TB = T * B
    NG = 3  # gates, PyTorch order [r | z | n]

    def kernel(tok_ref, table_ref, w_ref, b_ref, o_ref):
        f32 = jnp.float32

        # ---- fused embedding lookup: one-hot @ block-diagonal table (MXU) ----
        # tok_ref: (T*B, IN) int32, already offset by slot*VOCAB in the wrapper.
        toks = tok_ref[...]
        col = lax.broadcasted_iota(jnp.int32, (TB, IN * VOCAB), 1)
        hot = (col == toks[:, 0:1]).astype(f32)
        for i in range(1, IN):
            hot = hot + (col == toks[:, i:i + 1]).astype(f32)
        # table_ref: (IN*VOCAB, F) block-diagonal => x is already the reshaped
        # (slot-concatenated) GRU input feature matrix, time-major rows (t, b).
        x = jnp.dot(hot, table_ref[...], preferred_element_type=f32)   # (TB, F)

        # ---- per-gate weights / biases (all start at lane 0) ------------------
        b = b_ref[...]                                                  # (5, H)
        w_ih, w_hh = [], []
        for g in range(NG):
            wg = w_ref[g]                                               # (F+H, H)
            w_ih.append(wg[:F, :])                                      # (F, H)
            w_hh.append(wg[F:, :])                                      # (H, H)
        w_out = w_ref[NG][:H, :]                                        # (H, H) pad

        # ---- hoisted input projection: one matmul per gate, off the chain -----
        gi = [jnp.dot(x, w_ih[g], preferred_element_type=f32) + b[g:g + 1, :]
              for g in range(NG)]                                       # (TB, H)
        b_hn = b[NG:NG + 1, :]                                          # (1, H)

        # Pre-slice per-timestep gate inputs (h-independent -> off the chain).
        gi_r = [gi[0][t * B:(t + 1) * B, :] for t in range(T)]
        gi_z = [gi[1][t * B:(t + 1) * B, :] for t in range(T)]
        gi_n = [gi[2][t * B:(t + 1) * B, :] for t in range(T)]

        ones = jnp.ones((B, H), f32)                                    # hoisted

        # ---- serial recurrence, fully unrolled (T small & static) -------------
        h = jnp.zeros((B, H), f32)
        hs = []
        for t in range(T):
            gh_r = jnp.dot(h, w_hh[0], preferred_element_type=f32)
            gh_z = jnp.dot(h, w_hh[1], preferred_element_type=f32)
            gh_n = jnp.dot(h, w_hh[2], preferred_element_type=f32)
            r = jax.nn.sigmoid(gi_r[t] + gh_r)
            z = jax.nn.sigmoid(gi_z[t] + gh_z)
            n = jnp.tanh(gi_n[t] + r * (gh_n + b_hn))
            h = (ones - z) * n + z * h                    # PyTorch GRU update
            hs.append(h)

        # ---- hoisted output projection + single store --------------------------
        hs_cat = jnp.concatenate(hs, axis=0)                            # (TB, H)
        out = jnp.dot(hs_cat, w_out, preferred_element_type=f32) \
            + b[NG + 1:NG + 2, :]                                       # (TB, H)
        o_ref[...] = out[:, :O].astype(o_ref.dtype)                     # (TB, O)

    return kernel


# ------------------------------- wrapper --------------------------------------
def gru_linear_pallas(tokens, params):
    """tokens: (B, T, IN) int32. Returns (B, T, O) float32.

    All wrapper work below is zero-FLOP layout plumbing (packing / transposes of
    a few KB); the embedding lookup, GRU and linear all run in one Pallas call.
    """
    B, T, IN = tokens.shape
    emb = params["embedding"].astype(jnp.float32)         # (VOCAB, E)
    VOCAB, E = emb.shape
    F = IN * E
    w_ih = params["w_ih"].astype(jnp.float32)             # (F, 3H)  gates [r|z|n]
    w_hh = params["w_hh"].astype(jnp.float32)             # (H, 3H)
    b_ih = params["b_ih"].astype(jnp.float32)             # (3H,)
    b_hh = params["b_hh"].astype(jnp.float32)             # (3H,)
    w_out = params["w_out"].astype(jnp.float32)           # (H, O)
    b_out = params["b_out"].astype(jnp.float32)           # (O,)
    H = w_hh.shape[0]
    O = w_out.shape[1]

    # Time-major token ids, one row per (t, b); slot i offset by i*VOCAB so it
    # addresses block i of the block-diagonal table.
    off = jnp.arange(IN, dtype=jnp.int32) * VOCAB
    tok_tb = (jnp.transpose(tokens, (1, 0, 2)).astype(jnp.int32) + off
              ).reshape(T * B, IN)

    # Block-diagonal embedding table (IN*VOCAB, IN*E): one-hot @ table directly
    # yields the slot-concatenated GRU input features (fuses lookup + reshape).
    zeros_ve = jnp.zeros((VOCAB, E), jnp.float32)
    table = jnp.concatenate(
        [jnp.concatenate([emb if j == i else zeros_ve for j in range(IN)], axis=1)
         for i in range(IN)], axis=0)                      # (IN*VOCAB, F)

    # Per-gate weight slab: slab[g] = [W_ih_g ; W_hh_g] (F+H, H), slab[3] = padded
    # output projection.  Every gate's columns start at lane 0.
    def gate_cols(w, g):
        return w[:, g * H:(g + 1) * H]

    slabs = [jnp.concatenate([gate_cols(w_ih, g), gate_cols(w_hh, g)], axis=0)
             for g in range(3)]
    w_out_pad = jnp.concatenate(
        [jnp.concatenate([w_out, jnp.zeros((H, H - O), jnp.float32)], axis=1),
         jnp.zeros((F, H), jnp.float32)], axis=0)          # (F+H, H)
    w_slab = jnp.stack(slabs + [w_out_pad], axis=0)        # (4, F+H, H)

    # Bias slab (5, H): b_hh r/z folded into the input bias (they sit outside any
    # gate product); b_hh_n stays separate (inside r * (h@W_hn + b_hn)).
    b_slab = jnp.stack([
        b_ih[:H] + b_hh[:H],                               # r
        b_ih[H:2 * H] + b_hh[H:2 * H],                     # z
        b_ih[2 * H:],                                      # n (input part)
        b_hh[2 * H:],                                      # b_hh_n
        jnp.concatenate([b_out, jnp.zeros((H - O,), jnp.float32)]),
    ], axis=0)                                             # (5, H)

    vmem = pl.BlockSpec(memory_space=pltpu.MemorySpace.VMEM)
    out_tb = pl.pallas_call(
        _make_gru_kernel(B, T, IN, VOCAB, F, H, O),
        out_shape=jax.ShapeDtypeStruct((T * B, O), jnp.float32),
        in_specs=[vmem, vmem, vmem, vmem],
        out_specs=vmem,
    )(tok_tb, table, w_slab, b_slab)

    # (T*B, O) time-major -> (B, T, O): 640-byte layout plumbing in the wrapper.
    return jnp.transpose(out_tb.reshape(T, B, O), (1, 0, 2))


# ------------------------------ full forward ----------------------------------
def gru_module_forward(tokens, params, pred_len=None):
    """Mirrors GRU.forward in eval mode (Dropout1d is identity at inference)."""
    # TODO(synk): num_layers>1 / bidirectional variants not implemented
    # (single-layer, unidirectional GRU only).
    y = gru_linear_pallas(tokens, params)
    if pred_len:
        y = y[:, :pred_len, :]
    return y


# --------------------------- pure-JAX reference --------------------------------
def gru_reference(tokens, params):
    emb = params["embedding"][tokens]
    B, T = emb.shape[0], emb.shape[1]
    x = emb.reshape(B, T, -1).astype(jnp.float32)
    H = params["w_hh"].shape[0]

    def step(h, x_t):
        gi = x_t @ params["w_ih"] + params["b_ih"]
        gh = h @ params["w_hh"] + params["b_hh"]
        i_r, i_z, i_n = gi[:, :H], gi[:, H:2 * H], gi[:, 2 * H:]
        h_r, h_z, h_n = gh[:, :H], gh[:, H:2 * H], gh[:, 2 * H:]
        r = jax.nn.sigmoid(i_r + h_r)
        z = jax.nn.sigmoid(i_z + h_z)
        n = jnp.tanh(i_n + r * h_n)
        h_new = (1.0 - z) * n + z * h
        return h_new, h_new

    h0 = jnp.zeros((B, H), jnp.float32)
    _, hs = lax.scan(step, h0, jnp.transpose(x, (1, 0, 2)))   # (T, B, H)
    hs = jnp.transpose(hs, (1, 0, 2))                         # (B, T, H)
    return hs @ params["w_out"] + params["b_out"]


# ----------------------------------- main --------------------------------------
if __name__ == "__main__":
    # Deterministic small configuration.
    VOCAB = 16          # len(mapping)
    E = 8               # embedding_dim
    IN_SIZE = 3
    H = 32              # hidden_dim
    OUT = 5             # out_size
    B, T = 2, 8
    F = E * IN_SIZE

    key = jax.random.PRNGKey(0)
    keys = jax.random.split(key, 8)
    scale = 1.0 / jnp.sqrt(H)
    params = {
        "embedding": jax.random.normal(keys[0], (VOCAB, E), jnp.float32),
        # Stored pre-transposed: (in, 3H) / (H, 3H) / (H, out), gate order [r|z|n].
        "w_ih": jax.random.uniform(keys[1], (F, 3 * H), jnp.float32, -scale, scale),
        "w_hh": jax.random.uniform(keys[2], (H, 3 * H), jnp.float32, -scale, scale),
        "b_ih": jax.random.uniform(keys[3], (3 * H,), jnp.float32, -scale, scale),
        "b_hh": jax.random.uniform(keys[4], (3 * H,), jnp.float32, -scale, scale),
        "w_out": jax.random.uniform(keys[5], (H, OUT), jnp.float32, -scale, scale),
        "b_out": jax.random.uniform(keys[6], (OUT,), jnp.float32, -scale, scale),
    }
    tokens = jax.random.randint(keys[7], (B, T, IN_SIZE), 0, VOCAB, jnp.int32)

    fwd = jax.jit(functools.partial(gru_module_forward, pred_len=None))
    out = jax.block_until_ready(fwd(tokens, params))

    ref = jax.block_until_ready(gru_reference(tokens, params))
    assert out.shape == (B, T, OUT), out.shape
    assert jnp.allclose(out, ref, atol=1e-4, rtol=1e-4), \
        f"max abs err {jnp.max(jnp.abs(out - ref))}"

    print("KERNEL_OK")
</pallas_src>

<mosaic_0001>
module attributes {stable_mosaic.version = 11 : i64} {
  func.func @kernel(%arg0: memref<16x3xi32, #tpu.memory_space<vmem>>, %arg1: memref<48x24xf32, #tpu.memory_space<vmem>>, %arg2: memref<4x56x32xf32, #tpu.memory_space<vmem>>, %arg3: memref<5x32xf32, #tpu.memory_space<vmem>>, %arg4: memref<16x5xf32, #tpu.memory_space<vmem>>) attributes {dimension_semantics = [], scalar_prefetch = 0 : i64, scratch_operands = 0 : i64, tpu.core_type = #tpu.core_type<tc>} {
    %c0 = arith.constant 0 : index
    %c0_0 = arith.constant 0 : index
    %0 = vector.load %arg0[%c0, %c0_0] : memref<16x3xi32, #tpu.memory_space<vmem>>, vector<16x3xi32>
    %1 = tpu.iota {dimensions = array<i32: 1>} : vector<16x48xi32>
    %2 = vector.extract_strided_slice %0 {offsets = [0, 0], sizes = [16, 1], strides = [1, 1]} : vector<16x3xi32> to vector<16x1xi32>
    %3 = vector.broadcast %2 : vector<16x1xi32> to vector<16x48xi32>
    %4 = arith.cmpi eq, %1, %3 : vector<16x48xi32>
    %5 = arith.extui %4 : vector<16x48xi1> to vector<16x48xi32>
    %6 = arith.sitofp %5 : vector<16x48xi32> to vector<16x48xf32>
    %7 = vector.extract_strided_slice %0 {offsets = [0, 1], sizes = [16, 1], strides = [1, 1]} : vector<16x3xi32> to vector<16x1xi32>
    %8 = vector.broadcast %7 : vector<16x1xi32> to vector<16x48xi32>
    %9 = arith.cmpi eq, %1, %8 : vector<16x48xi32>
    %10 = arith.extui %9 : vector<16x48xi1> to vector<16x48xi32>
    %11 = arith.sitofp %10 : vector<16x48xi32> to vector<16x48xf32>
    %12 = arith.addf %6, %11 : vector<16x48xf32>
    %13 = vector.extract_strided_slice %0 {offsets = [0, 2], sizes = [16, 1], strides = [1, 1]} : vector<16x3xi32> to vector<16x1xi32>
    %14 = vector.broadcast %13 : vector<16x1xi32> to vector<16x48xi32>
    %15 = arith.cmpi eq, %1, %14 : vector<16x48xi32>
    %16 = arith.extui %15 : vector<16x48xi1> to vector<16x48xi32>
    %17 = arith.sitofp %16 : vector<16x48xi32> to vector<16x48xf32>
    %18 = arith.addf %12, %17 : vector<16x48xf32>
    %c0_1 = arith.constant 0 : index
    %c0_2 = arith.constant 0 : index
    %19 = vector.load %arg1[%c0_1, %c0_2] : memref<48x24xf32, #tpu.memory_space<vmem>>, vector<48x24xf32>
    %cst = arith.constant dense<0.000000e+00> : vector<16x24xf32>
    %20 = tpu.matmul %18, %19, %cst {dimension_numbers = #tpu.dot_dimension_numbers<[1], [0], [0], [1], [0, 0, 1, 1], [], []>} : vector<16x48xf32>, vector<48x24xf32>, vector<16x24xf32> -> vector<16x24xf32>
    %c0_3 = arith.constant 0 : index
    %c0_4 = arith.constant 0 : index
    %21 = vector.load %arg3[%c0_3, %c0_4] : memref<5x32xf32, #tpu.memory_space<vmem>>, vector<5x32xf32>
    %c0_5 = arith.constant 0 : index
    %c0_6 = arith.constant 0 : index
    %c0_7 = arith.constant 0 : index
    %22 = vector.load %arg2[%c0_5, %c0_6, %c0_7] : memref<4x56x32xf32, #tpu.memory_space<vmem>>, vector<1x56x32xf32>
    %23 = vector.shape_cast %22 : vector<1x56x32xf32> to vector<56x32xf32>
    %24 = vector.extract_strided_slice %23 {offsets = [0, 0], sizes = [24, 32], strides = [1, 1]} : vector<56x32xf32> to vector<24x32xf32>
    %25 = vector.extract_strided_slice %23 {offsets = [24, 0], sizes = [32, 32], strides = [1, 1]} : vector<56x32xf32> to vector<32x32xf32>
    %c1 = arith.constant 1 : index
    %c0_8 = arith.constant 0 : index
    %c0_9 = arith.constant 0 : index
    %26 = vector.load %arg2[%c1, %c0_8, %c0_9] : memref<4x56x32xf32, #tpu.memory_space<vmem>>, vector<1x56x32xf32>
    %27 = vector.shape_cast %26 : vector<1x56x32xf32> to vector<56x32xf32>
    %28 = vector.extract_strided_slice %27 {offsets = [0, 0], sizes = [24, 32], strides = [1, 1]} : vector<56x32xf32> to vector<24x32xf32>
    %29 = vector.extract_strided_slice %27 {offsets = [24, 0], sizes = [32, 32], strides = [1, 1]} : vector<56x32xf32> to vector<32x32xf32>
    %c2 = arith.constant 2 : index
    %c0_10 = arith.constant 0 : index
    %c0_11 = arith.constant 0 : index
    %30 = vector.load %arg2[%c2, %c0_10, %c0_11] : memref<4x56x32xf32, #tpu.memory_space<vmem>>, vector<1x56x32xf32>
    %31 = vector.shape_cast %30 : vector<1x56x32xf32> to vector<56x32xf32>
    %32 = vector.extract_strided_slice %31 {offsets = [0, 0], sizes = [24, 32], strides = [1, 1]} : vector<56x32xf32> to vector<24x32xf32>
    %33 = vector.extract_strided_slice %31 {offsets = [24, 0], sizes = [32, 32], strides = [1, 1]} : vector<56x32xf32> to vector<32x32xf32>
    %c3 = arith.constant 3 : index
    %c0_12 = arith.constant 0 : index
    %c0_13 = arith.constant 0 : index
    %34 = vector.load %arg2[%c3, %c0_12, %c0_13] : memref<4x56x32xf32, #tpu.memory_space<vmem>>, vector<1x56x32xf32>
    %35 = vector.shape_cast %34 : vector<1x56x32xf32> to vector<56x32xf32>
    %36 = vector.extract_strided_slice %35 {offsets = [0, 0], sizes = [32, 32], strides = [1, 1]} : vector<56x32xf32> to vector<32x32xf32>
    %cst_14 = arith.constant dense<0.000000e+00> : vector<16x32xf32>
    %37 = tpu.matmul %20, %24, %cst_14 {dimension_numbers = #tpu.dot_dimension_numbers<[1], [0], [0], [1], [0, 0, 1, 1], [], []>} : vector<16x24xf32>, vector<24x32xf32>, vector<16x32xf32> -> vector<16x32xf32>
    %38 = vector.extract_strided_slice %21 {offsets = [0, 0], sizes = [1, 32], strides = [1, 1]} : vector<5x32xf32> to vector<1x32xf32>
    %39 = vector.broadcast %38 : vector<1x32xf32> to vector<16x32xf32>
    %40 = arith.addf %37, %39 : vector<16x32xf32>
    %cst_15 = arith.constant dense<0.000000e+00> : vector<16x32xf32>
    %41 = tpu.matmul %20, %28, %cst_15 {dimension_numbers = #tpu.dot_dimension_numbers<[1], [0], [0], [1], [0, 0, 1, 1], [], []>} : vector<16x24xf32>, vector<24x32xf32>, vector<16x32xf32> -> vector<16x32xf32>
    %42 = vector.extract_strided_slice %21 {offsets = [1, 0], sizes = [1, 32], strides = [1, 1]} : vector<5x32xf32> to vector<1x32xf32>
    %43 = vector.broadcast %42 : vector<1x32xf32> to vector<16x32xf32>
    %44 = arith.addf %41, %43 : vector<16x32xf32>
    %cst_16 = arith.constant dense<0.000000e+00> : vector<16x32xf32>
    %45 = tpu.matmul %20, %32, %cst_16 {dimension_numbers = #tpu.dot_dimension_numbers<[1], [0], [0], [1], [0, 0, 1, 1], [], []>} : vector<16x24xf32>, vector<24x32xf32>, vector<16x32xf32> -> vector<16x32xf32>
    %46 = vector.extract_strided_slice %21 {offsets = [2, 0], sizes = [1, 32], strides = [1, 1]} : vector<5x32xf32> to vector<1x32xf32>
    %47 = vector.broadcast %46 : vector<1x32xf32> to vector<16x32xf32>
    %48 = arith.addf %45, %47 : vector<16x32xf32>
    %49 = vector.extract_strided_slice %21 {offsets = [3, 0], sizes = [1, 32], strides = [1, 1]} : vector<5x32xf32> to vector<1x32xf32>
    %50 = vector.extract_strided_slice %40 {offsets = [0, 0], sizes = [2, 32], strides = [1, 1]} : vector<16x32xf32> to vector<2x32xf32>
    %51 = vector.extract_strided_slice %40 {offsets = [2, 0], sizes = [2, 32], strides = [1, 1]} : vector<16x32xf32> to vector<2x32xf32>
    %52 = vector.extract_strided_slice %40 {offsets = [4, 0], sizes = [2, 32], strides = [1, 1]} : vector<16x32xf32> to vector<2x32xf32>
    %53 = vector.extract_strided_slice %40 {offsets = [6, 0], sizes = [2, 32], strides = [1, 1]} : vector<16x32xf32> to vector<2x32xf32>
    %54 = vector.extract_strided_slice %40 {offsets = [8, 0], sizes = [2, 32], strides = [1, 1]} : vector<16x32xf32> to vector<2x32xf32>
    %55 = vector.extract_strided_slice %40 {offsets = [10, 0], sizes = [2, 32], strides = [1, 1]} : vector<16x32xf32> to vector<2x32xf32>
    %56 = vector.extract_strided_slice %40 {offsets = [12, 0], sizes = [2, 32], strides = [1, 1]} : vector<16x32xf32> to vector<2x32xf32>
    %57 = vector.extract_strided_slice %40 {offsets = [14, 0], sizes = [2, 32], strides = [1, 1]} : vector<16x32xf32> to vector<2x32xf32>
    %58 = vector.extract_strided_slice %44 {offsets = [0, 0], sizes = [2, 32], strides = [1, 1]} : vector<16x32xf32> to vector<2x32xf32>
    %59 = vector.extract_strided_slice %44 {offsets = [2, 0], sizes = [2, 32], strides = [1, 1]} : vector<16x32xf32> to vector<2x32xf32>
    %60 = vector.extract_strided_slice %44 {offsets = [4, 0], sizes = [2, 32], strides = [1, 1]} : vector<16x32xf32> to vector<2x32xf32>
    %61 = vector.extract_strided_slice %44 {offsets = [6, 0], sizes = [2, 32], strides = [1, 1]} : vector<16x32xf32> to vector<2x32xf32>
    %62 = vector.extract_strided_slice %44 {offsets = [8, 0], sizes = [2, 32], strides = [1, 1]} : vector<16x32xf32> to vector<2x32xf32>
    %63 = vector.extract_strided_slice %44 {offsets = [10, 0], sizes = [2, 32], strides = [1, 1]} : vector<16x32xf32> to vector<2x32xf32>
    %64 = vector.extract_strided_slice %44 {offsets = [12, 0], sizes = [2, 32], strides = [1, 1]} : vector<16x32xf32> to vector<2x32xf32>
    %65 = vector.extract_strided_slice %44 {offsets = [14, 0], sizes = [2, 32], strides = [1, 1]} : vector<16x32xf32> to vector<2x32xf32>
    %66 = vector.extract_strided_slice %48 {offsets = [0, 0], sizes = [2, 32], strides = [1, 1]} : vector<16x32xf32> to vector<2x32xf32>
    %67 = vector.extract_strided_slice %48 {offsets = [2, 0], sizes = [2, 32], strides = [1, 1]} : vector<16x32xf32> to vector<2x32xf32>
    %68 = vector.extract_strided_slice %48 {offsets = [4, 0], sizes = [2, 32], strides = [1, 1]} : vector<16x32xf32> to vector<2x32xf32>
    %69 = vector.extract_strided_slice %48 {offsets = [6, 0], sizes = [2, 32], strides = [1, 1]} : vector<16x32xf32> to vector<2x32xf32>
    %70 = vector.extract_strided_slice %48 {offsets = [8, 0], sizes = [2, 32], strides = [1, 1]} : vector<16x32xf32> to vector<2x32xf32>
    %71 = vector.extract_strided_slice %48 {offsets = [10, 0], sizes = [2, 32], strides = [1, 1]} : vector<16x32xf32> to vector<2x32xf32>
    %72 = vector.extract_strided_slice %48 {offsets = [12, 0], sizes = [2, 32], strides = [1, 1]} : vector<16x32xf32> to vector<2x32xf32>
    %73 = vector.extract_strided_slice %48 {offsets = [14, 0], sizes = [2, 32], strides = [1, 1]} : vector<16x32xf32> to vector<2x32xf32>
    %cst_17 = arith.constant 1.000000e+00 : f32
    %74 = vector.broadcast %cst_17 : f32 to vector<2x32xf32>
    %cst_18 = arith.constant 0.000000e+00 : f32
    %75 = vector.broadcast %cst_18 : f32 to vector<2x32xf32>
    %cst_19 = arith.constant dense<0.000000e+00> : vector<2x32xf32>
    %76 = tpu.matmul %75, %25, %cst_19 {dimension_numbers = #tpu.dot_dimension_numbers<[1], [0], [0], [1], [0, 0, 1, 1], [], []>} : vector<2x32xf32>, vector<32x32xf32>, vector<2x32xf32> -> vector<2x32xf32>
    %cst_20 = arith.constant dense<0.000000e+00> : vector<2x32xf32>
    %77 = tpu.matmul %75, %29, %cst_20 {dimension_numbers = #tpu.dot_dimension_numbers<[1], [0], [0], [1], [0, 0, 1, 1], [], []>} : vector<2x32xf32>, vector<32x32xf32>, vector<2x32xf32> -> vector<2x32xf32>
    %cst_21 = arith.constant dense<0.000000e+00> : vector<2x32xf32>
    %78 = tpu.matmul %75, %33, %cst_21 {dimension_numbers = #tpu.dot_dimension_numbers<[1], [0], [0], [1], [0, 0, 1, 1], [], []>} : vector<2x32xf32>, vector<32x32xf32>, vector<2x32xf32> -> vector<2x32xf32>
    %79 = arith.addf %50, %76 : vector<2x32xf32>
    %80 = arith.negf %79 : vector<2x32xf32>
    %81 = math.exp %80 : vector<2x32xf32>
    %cst_22 = arith.constant 1.000000e+00 : f32
    %82 = vector.broadcast %cst_22 : f32 to vector<2x32xf32>
    %83 = arith.addf %82, %81 : vector<2x32xf32>
    %84 = arith.divf %82, %83 : vector<2x32xf32>
    %85 = arith.addf %58, %77 : vector<2x32xf32>
    %86 = arith.negf %85 : vector<2x32xf32>
    %87 = math.exp %86 : vector<2x32xf32>
    %cst_23 = arith.constant 1.000000e+00 : f32
    %88 = vector.broadcast %cst_23 : f32 to vector<2x32xf32>
    %89 = arith.addf %88, %87 : vector<2x32xf32>
    %90 = arith.divf %88, %89 : vector<2x32xf32>
    %91 = vector.broadcast %49 : vector<1x32xf32> to vector<2x32xf32>
    %92 = arith.addf %78, %91 : vector<2x32xf32>
    %93 = arith.mulf %84, %92 : vector<2x32xf32>
    %94 = arith.addf %66, %93 : vector<2x32xf32>
    %95 = math.tanh %94 : vector<2x32xf32>
    %96 = arith.subf %74, %90 : vector<2x32xf32>
    %97 = arith.mulf %96, %95 : vector<2x32xf32>
    %98 = arith.mulf %90, %75 : vector<2x32xf32>
    %99 = arith.addf %97, %98 : vector<2x32xf32>
    %cst_24 = arith.constant dense<0.000000e+00> : vector<2x32xf32>
    %100 = tpu.matmul %99, %25, %cst_24 {dimension_numbers = #tpu.dot_dimension_numbers<[1], [0], [0], [1], [0, 0, 1, 1], [], []>} : vector<2x32xf32>, vector<32x32xf32>, vector<2x32xf32> -> vector<2x32xf32>
    %cst_25 = arith.constant dense<0.000000e+00> : vector<2x32xf32>
    %101 = tpu.matmul %99, %29, %cst_25 {dimension_numbers = #tpu.dot_dimension_numbers<[1], [0], [0], [1], [0, 0, 1, 1], [], []>} : vector<2x32xf32>, vector<32x32xf32>, vector<2x32xf32> -> vector<2x32xf32>
    %cst_26 = arith.constant dense<0.000000e+00> : vector<2x32xf32>
    %102 = tpu.matmul %99, %33, %cst_26 {dimension_numbers = #tpu.dot_dimension_numbers<[1], [0], [0], [1], [0, 0, 1, 1], [], []>} : vector<2x32xf32>, vector<32x32xf32>, vector<2x32xf32> -> vector<2x32xf32>
    %103 = arith.addf %51, %100 : vector<2x32xf32>
    %104 = arith.negf %103 : vector<2x32xf32>
    %105 = math.exp %104 : vector<2x32xf32>
    %cst_27 = arith.constant 1.000000e+00 : f32
    %106 = vector.broadcast %cst_27 : f32 to vector<2x32xf32>
    %107 = arith.addf %106, %105 : vector<2x32xf32>
    %108 = arith.divf %106, %107 : vector<2x32xf32>
    %109 = arith.addf %59, %101 : vector<2x32xf32>
    %110 = arith.negf %109 : vector<2x32xf32>
    %111 = math.exp %110 : vector<2x32xf32>
    %cst_28 = arith.constant 1.000000e+00 : f32
    %112 = vector.broadcast %cst_28 : f32 to vector<2x32xf32>
    %113 = arith.addf %112, %111 : vector<2x32xf32>
    %114 = arith.divf %112, %113 : vector<2x32xf32>
    %115 = vector.broadcast %49 : vector<1x32xf32> to vector<2x32xf32>
    %116 = arith.addf %102, %115 : vector<2x32xf32>
    %117 = arith.mulf %108, %116 : vector<2x32xf32>
    %118 = arith.addf %67, %117 : vector<2x32xf32>
    %119 = math.tanh %118 : vector<2x32xf32>
    %120 = arith.subf %74, %114 : vector<2x32xf32>
    %121 = arith.mulf %120, %119 : vector<2x32xf32>
    %122 = arith.mulf %114, %99 : vector<2x32xf32>
    %123 = arith.addf %121, %122 : vector<2x32xf32>
    %cst_29 = arith.constant dense<0.000000e+00> : vector<2x32xf32>
    %124 = tpu.matmul %123, %25, %cst_29 {dimension_numbers = #tpu.dot_dimension_numbers<[1], [0], [0], [1], [0, 0, 1, 1], [], []>} : vector<2x32xf32>, vector<32x32xf32>, vector<2x32xf32> -> vector<2x32xf32>
    %cst_30 = arith.constant dense<0.000000e+00> : vector<2x32xf32>
    %125 = tpu.matmul %123, %29, %cst_30 {dimension_numbers = #tpu.dot_dimension_numbers<[1], [0], [0], [1], [0, 0, 1, 1], [], []>} : vector<2x32xf32>, vector<32x32xf32>, vector<2x32xf32> -> vector<2x32xf32>
    %cst_31 = arith.constant dense<0.000000e+00> : vector<2x32xf32>
    %126 = tpu.matmul %123, %33, %cst_31 {dimension_numbers = #tpu.dot_dimension_numbers<[1], [0], [0], [1], [0, 0, 1, 1], [], []>} : vector<2x32xf32>, vector<32x32xf32>, vector<2x32xf32> -> vector<2x32xf32>
    %127 = arith.addf %52, %124 : vector<2x32xf32>
    %128 = arith.negf %127 : vector<2x32xf32>
    %129 = math.exp %128 : vector<2x32xf32>
    %cst_32 = arith.constant 1.000000e+00 : f32
    %130 = vector.broadcast %cst_32 : f32 to vector<2x32xf32>
    %131 = arith.addf %130, %129 : vector<2x32xf32>
    %132 = arith.divf %130, %131 : vector<2x32xf32>
    %133 = arith.addf %60, %125 : vector<2x32xf32>
    %134 = arith.negf %133 : vector<2x32xf32>
    %135 = math.exp %134 : vector<2x32xf32>
    %cst_33 = arith.constant 1.000000e+00 : f32
    %136 = vector.broadcast %cst_33 : f32 to vector<2x32xf32>
    %137 = arith.addf %136, %135 : vector<2x32xf32>
    %138 = arith.divf %136, %137 : vector<2x32xf32>
    %139 = vector.broadcast %49 : vector<1x32xf32> to vector<2x32xf32>
    %140 = arith.addf %126, %139 : vector<2x32xf32>
    %141 = arith.mulf %132, %140 : vector<2x32xf32>
    %142 = arith.addf %68, %141 : vector<2x32xf32>
    %143 = math.tanh %142 : vector<2x32xf32>
    %144 = arith.subf %74, %138 : vector<2x32xf32>
    %145 = arith.mulf %144, %143 : vector<2x32xf32>
    %146 = arith.mulf %138, %123 : vector<2x32xf32>
    %147 = arith.addf %145, %146 : vector<2x32xf32>
    %cst_34 = arith.constant dense<0.000000e+00> : vector<2x32xf32>
    %148 = tpu.matmul %147, %25, %cst_34 {dimension_numbers = #tpu.dot_dimension_numbers<[1], [0], [0], [1], [0, 0, 1, 1], [], []>} : vector<2x32xf32>, vector<32x32xf32>, vector<2x32xf32> -> vector<2x32xf32>
    %cst_35 = arith.constant dense<0.000000e+00> : vector<2x32xf32>
    %149 = tpu.matmul %147, %29, %cst_35 {dimension_numbers = #tpu.dot_dimension_numbers<[1], [0], [0], [1], [0, 0, 1, 1], [], []>} : vector<2x32xf32>, vector<32x32xf32>, vector<2x32xf32> -> vector<2x32xf32>
    %cst_36 = arith.constant dense<0.000000e+00> : vector<2x32xf32>
    %150 = tpu.matmul %147, %33, %cst_36 {dimension_numbers = #tpu.dot_dimension_numbers<[1], [0], [0], [1], [0, 0, 1, 1], [], []>} : vector<2x32xf32>, vector<32x32xf32>, vector<2x32xf32> -> vector<2x32xf32>
    %151 = arith.addf %53, %148 : vector<2x32xf32>
    %152 = arith.negf %151 : vector<2x32xf32>
    %153 = math.exp %152 : vector<2x32xf32>
    %cst_37 = arith.constant 1.000000e+00 : f32
    %154 = vector.broadcast %cst_37 : f32 to vector<2x32xf32>
    %155 = arith.addf %154, %153 : vector<2x32xf32>
    %156 = arith.divf %154, %155 : vector<2x32xf32>
    %157 = arith.addf %61, %149 : vector<2x32xf32>
    %158 = arith.negf %157 : vector<2x32xf32>
    %159 = math.exp %158 : vector<2x32xf32>
    %cst_38 = arith.constant 1.000000e+00 : f32
    %160 = vector.broadcast %cst_38 : f32 to vector<2x32xf32>
    %161 = arith.addf %160, %159 : vector<2x32xf32>
    %162 = arith.divf %160, %161 : vector<2x32xf32>
    %163 = vector.broadcast %49 : vector<1x32xf32> to vector<2x32xf32>
    %164 = arith.addf %150, %163 : vector<2x32xf32>
    %165 = arith.mulf %156, %164 : vector<2x32xf32>
    %166 = arith.addf %69, %165 : vector<2x32xf32>
    %167 = math.tanh %166 : vector<2x32xf32>
    %168 = arith.subf %74, %162 : vector<2x32xf32>
    %169 = arith.mulf %168, %167 : vector<2x32xf32>
    %170 = arith.mulf %162, %147 : vector<2x32xf32>
    %171 = arith.addf %169, %170 : vector<2x32xf32>
    %cst_39 = arith.constant dense<0.000000e+00> : vector<2x32xf32>
    %172 = tpu.matmul %171, %25, %cst_39 {dimension_numbers = #tpu.dot_dimension_numbers<[1], [0], [0], [1], [0, 0, 1, 1], [], []>} : vector<2x32xf32>, vector<32x32xf32>, vector<2x32xf32> -> vector<2x32xf32>
    %cst_40 = arith.constant dense<0.000000e+00> : vector<2x32xf32>
    %173 = tpu.matmul %171, %29, %cst_40 {dimension_numbers = #tpu.dot_dimension_numbers<[1], [0], [0], [1], [0, 0, 1, 1], [], []>} : vector<2x32xf32>, vector<32x32xf32>, vector<2x32xf32> -> vector<2x32xf32>
    %cst_41 = arith.constant dense<0.000000e+00> : vector<2x32xf32>
    %174 = tpu.matmul %171, %33, %cst_41 {dimension_numbers = #tpu.dot_dimension_numbers<[1], [0], [0], [1], [0, 0, 1, 1], [], []>} : vector<2x32xf32>, vector<32x32xf32>, vector<2x32xf32> -> vector<2x32xf32>
    %175 = arith.addf %54, %172 : vector<2x32xf32>
    %176 = arith.negf %175 : vector<2x32xf32>
    %177 = math.exp %176 : vector<2x32xf32>
    %cst_42 = arith.constant 1.000000e+00 : f32
    %178 = vector.broadcast %cst_42 : f32 to vector<2x32xf32>
    %179 = arith.addf %178, %177 : vector<2x32xf32>
    %180 = arith.divf %178, %179 : vector<2x32xf32>
    %181 = arith.addf %62, %173 : vector<2x32xf32>
    %182 = arith.negf %181 : vector<2x32xf32>
    %183 = math.exp %182 : vector<2x32xf32>
    %cst_43 = arith.constant 1.000000e+00 : f32
    %184 = vector.broadcast %cst_43 : f32 to vector<2x32xf32>
    %185 = arith.addf %184, %183 : vector<2x32xf32>
    %186 = arith.divf %184, %185 : vector<2x32xf32>
    %187 = vector.broadcast %49 : vector<1x32xf32> to vector<2x32xf32>
    %188 = arith.addf %174, %187 : vector<2x32xf32>
    %189 = arith.mulf %180, %188 : vector<2x32xf32>
    %190 = arith.addf %70, %189 : vector<2x32xf32>
    %191 = math.tanh %190 : vector<2x32xf32>
    %192 = arith.subf %74, %186 : vector<2x32xf32>
    %193 = arith.mulf %192, %191 : vector<2x32xf32>
    %194 = arith.mulf %186, %171 : vector<2x32xf32>
    %195 = arith.addf %193, %194 : vector<2x32xf32>
    %cst_44 = arith.constant dense<0.000000e+00> : vector<2x32xf32>
    %196 = tpu.matmul %195, %25, %cst_44 {dimension_numbers = #tpu.dot_dimension_numbers<[1], [0], [0], [1], [0, 0, 1, 1], [], []>} : vector<2x32xf32>, vector<32x32xf32>, vector<2x32xf32> -> vector<2x32xf32>
    %cst_45 = arith.constant dense<0.000000e+00> : vector<2x32xf32>
    %197 = tpu.matmul %195, %29, %cst_45 {dimension_numbers = #tpu.dot_dimension_numbers<[1], [0], [0], [1], [0, 0, 1, 1], [], []>} : vector<2x32xf32>, vector<32x32xf32>, vector<2x32xf32> -> vector<2x32xf32>
    %cst_46 = arith.constant dense<0.000000e+00> : vector<2x32xf32>
    %198 = tpu.matmul %195, %33, %cst_46 {dimension_numbers = #tpu.dot_dimension_numbers<[1], [0], [0], [1], [0, 0, 1, 1], [], []>} : vector<2x32xf32>, vector<32x32xf32>, vector<2x32xf32> -> vector<2x32xf32>
    %199 = arith.addf %55, %196 : vector<2x32xf32>
    %200 = arith.negf %199 : vector<2x32xf32>
    %201 = math.exp %200 : vector<2x32xf32>
    %cst_47 = arith.constant 1.000000e+00 : f32
    %202 = vector.broadcast %cst_47 : f32 to vector<2x32xf32>
    %203 = arith.addf %202, %201 : vector<2x32xf32>
    %204 = arith.divf %202, %203 : vector<2x32xf32>
    %205 = arith.addf %63, %197 : vector<2x32xf32>
    %206 = arith.negf %205 : vector<2x32xf32>
    %207 = math.exp %206 : vector<2x32xf32>
    %cst_48 = arith.constant 1.000000e+00 : f32
    %208 = vector.broadcast %cst_48 : f32 to vector<2x32xf32>
    %209 = arith.addf %208, %207 : vector<2x32xf32>
    %210 = arith.divf %208, %209 : vector<2x32xf32>
    %211 = vector.broadcast %49 : vector<1x32xf32> to vector<2x32xf32>
    %212 = arith.addf %198, %211 : vector<2x32xf32>
    %213 = arith.mulf %204, %212 : vector<2x32xf32>
    %214 = arith.addf %71, %213 : vector<2x32xf32>
    %215 = math.tanh %214 : vector<2x32xf32>
    %216 = arith.subf %74, %210 : vector<2x32xf32>
    %217 = arith.mulf %216, %215 : vector<2x32xf32>
    %218 = arith.mulf %210, %195 : vector<2x32xf32>
    %219 = arith.addf %217, %218 : vector<2x32xf32>
    %cst_49 = arith.constant dense<0.000000e+00> : vector<2x32xf32>
    %220 = tpu.matmul %219, %25, %cst_49 {dimension_numbers = #tpu.dot_dimension_numbers<[1], [0], [0], [1], [0, 0, 1, 1], [], []>} : vector<2x32xf32>, vector<32x32xf32>, vector<2x32xf32> -> vector<2x32xf32>
    %cst_50 = arith.constant dense<0.000000e+00> : vector<2x32xf32>
    %221 = tpu.matmul %219, %29, %cst_50 {dimension_numbers = #tpu.dot_dimension_numbers<[1], [0], [0], [1], [0, 0, 1, 1], [], []>} : vector<2x32xf32>, vector<32x32xf32>, vector<2x32xf32> -> vector<2x32xf32>
    %cst_51 = arith.constant dense<0.000000e+00> : vector<2x32xf32>
    %222 = tpu.matmul %219, %33, %cst_51 {dimension_numbers = #tpu.dot_dimension_numbers<[1], [0], [0], [1], [0, 0, 1, 1], [], []>} : vector<2x32xf32>, vector<32x32xf32>, vector<2x32xf32> -> vector<2x32xf32>
    %223 = arith.addf %56, %220 : vector<2x32xf32>
    %224 = arith.negf %223 : vector<2x32xf32>
    %225 = math.exp %224 : vector<2x32xf32>
    %cst_52 = arith.constant 1.000000e+00 : f32
    %226 = vector.broadcast %cst_52 : f32 to vector<2x32xf32>
    %227 = arith.addf %226, %225 : vector<2x32xf32>
    %228 = arith.divf %226, %227 : vector<2x32xf32>
    %229 = arith.addf %64, %221 : vector<2x32xf32>
    %230 = arith.negf %229 : vector<2x32xf32>
    %231 = math.exp %230 : vector<2x32xf32>
    %cst_53 = arith.constant 1.000000e+00 : f32
    %232 = vector.broadcast %cst_53 : f32 to vector<2x32xf32>
    %233 = arith.addf %232, %231 : vector<2x32xf32>
    %234 = arith.divf %232, %233 : vector<2x32xf32>
    %235 = vector.broadcast %49 : vector<1x32xf32> to vector<2x32xf32>
    %236 = arith.addf %222, %235 : vector<2x32xf32>
    %237 = arith.mulf %228, %236 : vector<2x32xf32>
    %238 = arith.addf %72, %237 : vector<2x32xf32>
    %239 = math.tanh %238 : vector<2x32xf32>
    %240 = arith.subf %74, %234 : vector<2x32xf32>
    %241 = arith.mulf %240, %239 : vector<2x32xf32>
    %242 = arith.mulf %234, %219 : vector<2x32xf32>
    %243 = arith.addf %241, %242 : vector<2x32xf32>
    %cst_54 = arith.constant dense<0.000000e+00> : vector<2x32xf32>
    %244 = tpu.matmul %243, %25, %cst_54 {dimension_numbers = #tpu.dot_dimension_numbers<[1], [0], [0], [1], [0, 0, 1, 1], [], []>} : vector<2x32xf32>, vector<32x32xf32>, vector<2x32xf32> -> vector<2x32xf32>
    %cst_55 = arith.constant dense<0.000000e+00> : vector<2x32xf32>
    %245 = tpu.matmul %243, %29, %cst_55 {dimension_numbers = #tpu.dot_dimension_numbers<[1], [0], [0], [1], [0, 0, 1, 1], [], []>} : vector<2x32xf32>, vector<32x32xf32>, vector<2x32xf32> -> vector<2x32xf32>
    %cst_56 = arith.constant dense<0.000000e+00> : vector<2x32xf32>
    %246 = tpu.matmul %243, %33, %cst_56 {dimension_numbers = #tpu.dot_dimension_numbers<[1], [0], [0], [1], [0, 0, 1, 1], [], []>} : vector<2x32xf32>, vector<32x32xf32>, vector<2x32xf32> -> vector<2x32xf32>
    %247 = arith.addf %57, %244 : vector<2x32xf32>
    %248 = arith.negf %247 : vector<2x32xf32>
    %249 = math.exp %248 : vector<2x32xf32>
    %cst_57 = arith.constant 1.000000e+00 : f32
    %250 = vector.broadcast %cst_57 : f32 to vector<2x32xf32>
    %251 = arith.addf %250, %249 : vector<2x32xf32>
    %252 = arith.divf %250, %251 : vector<2x32xf32>
    %253 = arith.addf %65, %245 : vector<2x32xf32>
    %254 = arith.negf %253 : vector<2x32xf32>
    %255 = math.exp %254 : vector<2x32xf32>
    %cst_58 = arith.constant 1.000000e+00 : f32
    %256 = vector.broadcast %cst_58 : f32 to vector<2x32xf32>
    %257 = arith.addf %256, %255 : vector<2x32xf32>
    %258 = arith.divf %256, %257 : vector<2x32xf32>
    %259 = vector.broadcast %49 : vector<1x32xf32> to vector<2x32xf32>
    %260 = arith.addf %246, %259 : vector<2x32xf32>
    %261 = arith.mulf %252, %260 : vector<2x32xf32>
    %262 = arith.addf %73, %261 : vector<2x32xf32>
    %263 = math.tanh %262 : vector<2x32xf32>
    %264 = arith.subf %74, %258 : vector<2x32xf32>
    %265 = arith.mulf %264, %263 : vector<2x32xf32>
    %266 = arith.mulf %258, %243 : vector<2x32xf32>
    %267 = arith.addf %265, %266 : vector<2x32xf32>
    %268 = tpu.concatenate %99, %123, %147, %171, %195, %219, %243, %267 in 0 : vector<2x32xf32>, vector<2x32xf32>, vector<2x32xf32>, vector<2x32xf32>, vector<2x32xf32>, vector<2x32xf32>, vector<2x32xf32>, vector<2x32xf32> -> vector<16x32xf32>
    %cst_59 = arith.constant dense<0.000000e+00> : vector<16x32xf32>
    %269 = tpu.matmul %268, %36, %cst_59 {dimension_numbers = #tpu.dot_dimension_numbers<[1], [0], [0], [1], [0, 0, 1, 1], [], []>} : vector<16x32xf32>, vector<32x32xf32>, vector<16x32xf32> -> vector<16x32xf32>
    %270 = vector.extract_strided_slice %21 {offsets = [4, 0], sizes = [1, 32], strides = [1, 1]} : vector<5x32xf32> to vector<1x32xf32>
    %271 = vector.broadcast %270 : vector<1x32xf32> to vector<16x32xf32>
    %272 = arith.addf %269, %271 : vector<16x32xf32>
    %273 = vector.extract_strided_slice %272 {offsets = [0, 0], sizes = [16, 5], strides = [1, 1]} : vector<16x32xf32> to vector<16x5xf32>
    %c0_60 = arith.constant 0 : index
    %c0_61 = arith.constant 0 : index
    %274 = vector.load %arg4[%c0_60, %c0_61] : memref<16x5xf32, #tpu.memory_space<vmem>>, vector<16x5xf32>
    tpu.vector_store %arg4[%c0_60, %c0_61], %273 {strides = array<i32>} : memref<16x5xf32, #tpu.memory_space<vmem>>, vector<16x5xf32>,
    return
  }
}

</mosaic_0001>

<bundles_post_ra>
// kernel: gru_module_forward.1
= control target key start
LH: loop header
LB: loop body
LE: loop exit
PB: predicated region body
PF: predicated region fallthrough
CT: control target
= control target key end

     0   :  { %v3277_v0 = vmov 0   ;;  %v3278_v6 = vmov 1   ;;  %v3279_v12 = vmov 2   ;;  %v19_v20 = vlaneseq  ;;  %s3695_s0 = inlined_call_operand.vmem [shape: s32[16,3], index: 0, kind: input, shape index: {}]   ;;  %s3696_s1 = inlined_call_operand.vmem [shape: f32[48,24], index: 1, kind: input, shape index: {}]   ;;  %s3697_s2 = inlined_call_operand.vmem [shape: f32[4,56,32], index: 2, kind: input, shape index: {}]   ;;  %s3698_s3 = inlined_call_operand.vmem [shape: f32[5,32], index: 3, kind: input, shape index: {}]   ;;  %s3699_s4 = inlined_call_operand.vmem [shape: f32[16,5], index: 4, kind: output, shape index: {}]  }
   0x1   :  { %3193 = vset.pattern.permute.xlu1 %v3277_v0  ;;  %3191 = vset.pattern.permute.xlu0 %v3277_v0  ;;  %v18_v1 = vld [vmem:[%s3695_s0 + $0x8] sm:$0xff]  ;;  %v17_v2 = vld [vmem:[%s3695_s0] sm:$0xff]  ;;  %v63_v7 = vld [vmem:[%s3696_s1 + $0x10] sm:$0xff]  ;;  %v3280_v26 = vmov 0.0   ;;  %vm67_vm6 = vcmask 392192   ;;  %v3281_v44 = vmov 0.0|0.0  }
   0x2   :  { %25 = vperm.xlu1 %3193, %v18_v1   ;;  %22 = vperm.xlu0 %3191, %v17_v2   ;;  %v61_v3 = vld [vmem:[%s3696_s1] sm:$0xff]  ;;  %v62_v4 = vld [vmem:[%s3696_s1 + $0x8] sm:$0xff]  ;;  %v64_v8 = vld [vmem:[%s3696_s1 + $0x18] sm:$0xff]  ;;  %v20_v23 = vand.u32 127, %v19_v20  ;;  %vm182_vm7 = vcmask 195584   ;;  %vm3282_vm8 = vmmov 0  }
   0x3   :  { %v3009_v5 = vpack.c.bf16 %v62_v4, %v61_v3  ;;  %v3013_v9 = vpack.c.bf16 %v64_v8, %v63_v7  ;;  %v65_v10 = vld [vmem:[%s3696_s1 + $0x20] sm:$0xff]  ;;  %v66_v11 = vld [vmem:[%s3696_s1 + $0x28] sm:$0xff]  ;;  %v2487_v16 = vld [vmem:[%s3697_s2 + $0x70] sm:$0xff]  ;;  %vm422_vm9 = vcmask 261120   ;;  %vm2371_vm10 = vcmask 1041408  }
   0x4   :  { %v3017_v13 = vpack.c.bf16 %v66_v11, %v65_v10  ;;  %v150_v14 = vld [vmem:[%s3697_s2] sm:$0xff]  ;;  %v151_v15 = vld [vmem:[%s3697_s2 + $0x8] sm:$0xff]  ;;  %v2488_v18 = vld [vmem:[%s3697_s2 + $0x78] sm:$0xff]  ;;  %vm2373_vm11 = vcmask 1043456   ;;  %vm2375_vm12 = vcmask 1045504   ;;  %vm2465_vm13 = vcmask 39936  }
   0x5   :  { %3010 = vmatprep.subr.bf16.mxu0 %v3009_v5  ;;  %v3021_v17 = vpack.c.bf16 %v151_v15, %v150_v14  ;;  %v3029_v19 = vpack.c.bf16 %v2488_v18, %v2487_v16  ;;  %v152_v39 = vld [vmem:[%s3697_s2 + $0x10] sm:$0xff]  ;;  %v2480_v40 = vld [vmem:[%s3697_s2 + $0x38] sm:$0xff]  ;;  %v2481_v41 = vld [vmem:[%s3697_s2 + $0x40] sm:$0xff] }
   0x6   :  { %3194 = vset.pattern.permute.xlu1 %v3278_v6  ;;  %3192 = vset.pattern.permute.xlu0 %v3278_v6  ;;  %v2489_v42 = vld [vmem:[%s3697_s2 + $0x80] sm:$0xff]  ;;  %v3025_v43 = vpack.c.bf16 %v2481_v41, %v2480_v40  ;;  %v2483_v45 = vld [vmem:[%s3697_s2 + $0x50] sm:$0xff]  ;;  %v2484_v46 = vld [vmem:[%s3697_s2 + $0x58] sm:$0xff] }
   0x7   :  { %37 = vperm.xlu1 %3194, %v18_v1   ;;  %34 = vperm.xlu0 %3192, %v17_v2   ;;  %v3370_v49 = vpack.c.bf16 %v2484_v46, %v2483_v45  ;;  %v2482_v50 = vld [vmem:[%s3697_s2 + $0x48] sm:$0xff]  ;;  %v2485_v51 = vld [vmem:[%s3697_s2 + $0x60] sm:$0xff]  ;;  %v153_v53 = vld [vmem:[%s3697_s2 + $0x18] sm:$0xff] }
   0x8   :  { %3012 = vmatpush3.bf16.msra.mxu0 %v3009_v5  ;;  %3022 = vmatprep.subr.bf16.mxu1 %v3021_v17  ;;  %v2486_v52 = vld [vmem:[%s3697_s2 + $0x68] sm:$0xff]  ;;  %v154_v54 = vld [vmem:[%s3697_s2 + $0x20] sm:$0xff]  ;;  %v156_v58 = vld [vmem:[%s3697_s2 + $0x30] sm:$0xff] }
   0x9   :  { %3014 = vmatprep.subr.bf16.mxu0 %v3013_v9  ;;  %3024 = vmatpush3.bf16.msra.mxu1 %v3021_v17  ;;  %v3394_v55 = vpack.c.bf16 %v2486_v52, %v2485_v51  ;;  %v3396_v56 = vpack.c.bf16 %v154_v54, %v153_v53  ;;  %v155_v57 = vld [vmem:[%s3697_s2 + $0x28] sm:$0xff]  ;;  %v2491_v61 = vld [vmem:[%s3697_s2 + $0x90] sm:$0xff]  ;;  %v2492_v63 = vld [vmem:[%s3697_s2 + $0x98] sm:$0xff] }
   0xa   :  { %2711 = vmatprep.subr.mxu1 %v152_v39  ;;  %v3410_v59 = vpack.c.bf16 %v156_v58, %v155_v57  ;;  %v2490_v60 = vld [vmem:[%s3697_s2 + $0x88] sm:$0xff]  ;;  %v2493_v0 = vld [vmem:[%s3697_s2 + $0xa0] sm:$0xff] }
   0xb   :  { %3195 = vset.pattern.permute.xlu1 %v3279_v12  ;;  %3196 = vset.pattern.permute.xlu0 %v3279_v12  ;;  %v3424_v62 = vpack.c.bf16 %v2491_v61, %v2490_v60  ;;  %v3463_v5 = vld [vmem:[%s3698_s3] sm:$0x1f] }
   0xc   :  { %48 = vperm.xlu1 %3195, %v17_v2   ;;  %51 = vperm.xlu0 %3196, %v18_v1   ;;  %v3439_v1 = vpack.c.bf16 %v2493_v0, %v2492_v63  ;;  %v3456_v2 = vshrl.u32 %v19_v20, 7 }
   0xd   :  { %3016 = vmatpush3.bf16.msra.mxu0 %v3013_v9  ;;  %2712 = vmatpush3.msra.mxu1 %v152_v39 }
   0xe   :  { %3018 = vmatprep.subr.bf16.mxu0 %v3017_v13  ;;  %3026 = vmatprep.subr.bf16.mxu1 %v3025_v43  ;;  %v180_v3 = vsub.s32 0, %v3456_v2  ;;  %v345_v4 = vsub.s32 2, %v3456_v2  ;;  %v266_v8 = vsub.s32 1, %v3456_v2 }
  0x10   :  { %v181_v6 = vrot.slane %v3463_v5, %v180_v3  ;;  %v346_v7 = vrot.slane %v3463_v5, %v345_v4  ;;  %v267_v15 = vrot.slane %v3463_v5, %v266_v8 }
  0x11   :  { %3020 = vmatpush3.bf16.msra.mxu0 %v3017_v13 }
  0x12   :  { %3030 = vmatprep.subr.bf16.mxu0 %v3029_v19 }
  0x81   :  { %v26_v21 = vpop.permute.xlu1 %25  ;;  %v23_v22 = vpop.permute.xlu0 %22 }
  0x82   :  { %vm28_vm2 = vcmp.eq.s32.totalorder %v20_v23, %v26_v21  ;;  %vm27_vm3 = vcmp.eq.s32.totalorder %v20_v23, %v23_v22 }
  0x83   :  { %v2473_v29 = vsel %vm28_vm2, 1.0, %v3280_v26  ;;  %v2472_v30 = vsel %vm27_vm3, 1.0, %v3280_v26 }
  0x86   :  { %v38_v24 = vpop.permute.xlu1 %37  ;;  %v35_v25 = vpop.permute.xlu0 %34 }
  0x87   :  { %vm40_vm0 = vcmp.eq.s32.totalorder %v20_v23, %v38_v24  ;;  %vm39_vm1 = vcmp.eq.s32.totalorder %v20_v23, %v35_v25 }
  0x88   :  { %v2475_v27 = vsel %vm40_vm0, 1.0, %v3280_v26  ;;  %v2474_v28 = vsel %vm39_vm1, 1.0, %v3280_v26 }
  0x89   :  { %v46_v33 = vadd.f32 %v2475_v27, %v2473_v29  ;;  %v45_v34 = vadd.f32 %v2474_v28, %v2472_v30 }
  0x8b   :  { %v49_v31 = vpop.permute.xlu1 %48  ;;  %v52_v32 = vpop.permute.xlu0 %51 }
  0x8c   :  { %vm53_vm4 = vcmp.eq.s32.totalorder %v20_v23, %v49_v31  ;;  %vm54_vm5 = vcmp.eq.s32.totalorder %v20_v23, %v52_v32 }
  0x8d   :  { %v2476_v35 = vsel %vm53_vm4, 1.0, %v3280_v26  ;;  %v2477_v36 = vsel %vm54_vm5, 1.0, %v3280_v26 }
  0x8e   :  { %v60_v37 = vadd.f32 %v2477_v36, %v46_v33  ;;  %v59_v38 = vadd.f32 %v2476_v35, %v45_v34  ;;  %v582_v34 = vsub.s32 3, %v3456_v2 }
  0x90   :  { %2704 = vmatprep.mubr.msk.f32.mxu0 %vm67_vm6, %v59_v38  ;;  %v3483_v35 = vrot.slane %v3463_v5, %v582_v34 }
  0x91   :  { %2705 = vmatmul.mubr.msk.f32.vlgmr.msra.gmra.mrb[0].mxu0 %vm67_vm6, %v60_v37 }
  0x92   :  { %3032 = vmatpush3.bf16.msra.mxu0 %v3029_v19 }
  0x93   :  { %2729 = vmatprep.subr.mxu0 %v2489_v42 }
  0x96   :  { %2730 = vmatpush3.msra.mxu0 %v2489_v42 }
  0x97   :  { %3039 = vmatprep.subr.bf16.mxu0 %v3281_v44 }
 0x164   :  { %v2706_v47 = vpop.f32.mrb[0].mxu0 }
 0x165   :  { %v140_v48 = vpop.f32.mrb[1].mxu0 }
 0x166   :  { %2713 = vmatprep.mubr.msk.f32.mxu1 %vm182_vm7, %v140_v48  ;;  %2731 = vmatprep.mubr.msk.f32.mxu0 %vm182_vm7, %v140_v48 }
 0x167   :  { %2714 = vmatmul.mubr.msk.f32.vlgmr.msra.gmra.mrb[0].mxu1 %vm182_vm7, %v2706_v47  ;;  %2732 = vmatmul.mubr.msk.f32.vlgmr.msra.gmra.mrb[2].mxu0 %vm182_vm7, %v2706_v47 }
 0x168   :  { %3028 = vmatpush3.bf16.msra.mxu1 %v3025_v43  ;;  %2722 = vmatprep.mubr.msk.f32.mxu1 %vm182_vm7, %v140_v48 }
 0x169   :  { %3041 = vmatpush3.bf16.msra.mxu0 %v3370_v49  ;;  %2720 = vmatprep.subr.mxu1 %v2482_v50 }
 0x16a   :  { %3042 = vmatprep.subr.bf16.mxu0 %v3281_v44  ;;  %2753 = vmatprep.mubr.msk.f32.mxu0 %vm3282_vm8, %v3280_v26 }
 0x16c   :  { %2721 = vmatpush3.msra.mxu1 %v2482_v50 }
 0x16d   :  { %2723 = vmatmul.mubr.msk.f32.vlgmr.msra.gmra.mrb[2].mxu1 %vm182_vm7, %v2706_v47  ;;  %3033 = vmatprep.subr.bf16.mxu1 %v3281_v44 }
 0x16e   :  { %3044 = vmatpush3.bf16.msra.mxu0 %v3394_v55  ;;  %3035 = vmatpush3.bf16.msra.mxu1 %v3396_v56 }
 0x16f   :  { %3036 = vmatprep.subr.bf16.mxu1 %v3281_v44  ;;  %2742 = vmatprep.mubr.msk.f32.mxu1 %vm3282_vm8, %v3280_v26 }
 0x170   :  { %3051 = vmatprep.subr.bf16.mxu0 %v3281_v44 }
 0x171   :  { %2754 = vmatmul.mubr.f32.vlgmr.msra.gmra.mrb[4].mxu0 %v3280_v26 }
 0x172   :  { %3038 = vmatpush3.bf16.msra.mxu1 %v3410_v59  ;;  %3053 = vmatpush3.bf16.msra.mxu0 %v3396_v56 }
 0x173   :  { %3045 = vmatprep.subr.bf16.mxu1 %v3281_v44  ;;  %3054 = vmatprep.subr.bf16.mxu0 %v3281_v44 }
 0x174   :  { %2775 = vmatprep.mubr.msk.f32.mxu0 %vm3282_vm8, %v3280_v26 }
 0x175   :  { %2743 = vmatmul.mubr.f32.vlgmr.msra.gmra.mrb[4].mxu1 %v3280_v26 }
 0x176   :  { %3047 = vmatpush3.bf16.msra.mxu1 %v3424_v62  ;;  %2764 = vmatprep.mubr.msk.f32.mxu1 %vm3282_vm8, %v3280_v26 }
 0x177   :  { %3048 = vmatprep.subr.bf16.mxu1 %v3281_v44  ;;  %3056 = vmatpush3.bf16.msra.mxu0 %v3410_v59 }
 0x178   :  { %3063 = vmatprep.subr.bf16.mxu0 %v3281_v44 }
 0x17a   :  { %3050 = vmatpush3.bf16.msra.mxu1 %v3439_v1 }
 0x17b   :  { %3057 = vmatprep.subr.bf16.mxu1 %v3281_v44 }
 0x17d   :  { %2765 = vmatmul.mubr.f32.vlgmr.msra.gmra.mrb[6].mxu1 %v3280_v26 }
 0x17e   :  { %3059 = vmatpush3.bf16.msra.mxu1 %v3370_v49  ;;  %2786 = vmatprep.mubr.msk.f32.mxu1 %vm3282_vm8, %v3280_v26 }
 0x17f   :  { %3060 = vmatprep.subr.bf16.mxu1 %v3281_v44 }
 0x182   :  { %3062 = vmatpush3.bf16.msra.mxu1 %v3394_v55 }
 0x183   :  { %3069 = vmatprep.subr.bf16.mxu1 %v3281_v44 }
 0x23a   :  { %v2715_v9 = vpop.f32.mrb[0].mxu1  ;;  %v2733_v10 = vpop.f32.mrb[2].mxu0 }
 0x23b   :  { %v3468_v11 = vadd.f32 %v2715_v9, %v181_v6  ;;  %v3470_v12 = vadd.f32 %v2733_v10, %v346_v7  ;;  %v255_v13 = vpop.f32.mrb[1].mxu1  ;;  %v413_v14 = vpop.f32.mrb[3].mxu0 }
 0x23c   :  { %v3475_v21 = vadd.f32 %v255_v13, %v181_v6  ;;  %v3486_v40 = vadd.f32 %v413_v14, %v346_v7 }
 0x240   :  { %v2724_v16 = vpop.f32.mrb[2].mxu1 }
 0x241   :  { %v3473_v17 = vadd.f32 %v2724_v16, %v267_v15  ;;  %v334_v18 = vpop.f32.mrb[3].mxu1 }
 0x242   :  { %v3477_v22 = vadd.f32 %v334_v18, %v267_v15 }
 0x244   :  { %v562_v19 = vpop.f32.mrb[4].mxu0 }
 0x245   :  { %v2755_v20 = vpop.f32.mrb[5].mxu0  ;;  %v573_v28 = vadd.f32 %v562_v19, %v3477_v22 }
 0x247   :  { %v2505_v29 = vmul.f32 -1.442695, %v573_v28 }
 0x248   :  { %v492_v23 = vpop.f32.mrb[4].mxu1 }
 0x249   :  { %v566_v24 = vadd.f32 %v492_v23, %v3475_v21  ;;  %v2744_v25 = vpop.f32.mrb[5].mxu1 }
 0x24b   :  { %v2504_v27 = vmul.f32 -1.442695, %v566_v24 }
 0x24d   :  { %3197 = vpow2.f32 %v2504_v27 }
 0x24e   :  { %3199 = vpow2.f32 %v2505_v29 }
 0x250   :  { %v650_v30 = vpop.f32.mrb[6].mxu1 }
 0x251   :  { %v2766_v31 = vpop.f32.mrb[7].mxu1  ;;  %v651_v38 = vadd.f32 %v650_v30, %v3483_v35 }
 0x257   :  { %v3198_v32 = vpop.eup %3197 }
 0x258   :  { %v570_v33 = vadd.f32 1.0, %v3198_v32  ;;  %v3200_v36 = vpop.eup %3199 }
 0x259   :  { %v577_v37 = vadd.f32 1.0, %v3200_v36 }
 0x25a   :  { %3201 = vrcp.f32 %v570_v33 }
 0x25b   :  { %3203 = vrcp.f32 %v577_v37 }
 0x264   :  { %v3202_v39 = vpop.eup %3201 }
 0x265   :  { %v654_v41 = vmul.f32 %v3202_v39, %v651_v38  ;;  %v3204_v43 = vpop.eup %3203 }
 0x266   :  { %v657_v45 = vsub.f32 1.0, %v3204_v43  ;;  %v659_v48 = vmul.f32 0.0, %v3204_v43 }
 0x267   :  { %v655_v42 = vadd.f32 %v654_v41, %v3486_v40 }
 0x269   :  { %3205 = vtanh.f32 %v655_v42 }
 0x273   :  { %v3206_v46 = vpop.eup %3205 }
 0x274   :  { %v658_v47 = vmul.f32 %v3206_v46, %v657_v45 }
 0x276   :  { %v3489_v50 = vadd.f32 %v659_v48, %v658_v47 }
 0x278   :  { %2776 = vmatmul.mubr.msk.f32.vlgmr.msra.gmra.mrb[6].mxu0 %vm422_vm9, %v3489_v50  ;;  %2787 = vmatmul.mubr.msk.f32.vlgmr.msra.gmra.mrb[8].mxu1 %vm422_vm9, %v3489_v50  ;;  %v902_v20 = vrot.slane %v3489_v50, 6 }
 0x279   :  { %3065 = vmatpush3.bf16.msra.mxu0 %v3424_v62  ;;  %2797 = vmatprep.mubr.msk.f32.mxu0 %vm3282_vm8, %v3280_v26 }
 0x27a   :  { %3066 = vmatprep.subr.bf16.mxu0 %v3281_v44  ;;  %3071 = vmatpush3.bf16.msra.mxu1 %v3396_v56 }
 0x27b   :  { %3072 = vmatprep.subr.bf16.mxu1 %v3281_v44  ;;  %2808 = vmatprep.mubr.msk.f32.mxu1 %vm3282_vm8, %v3280_v26 }
 0x27d   :  { %3068 = vmatpush3.bf16.msra.mxu0 %v3439_v1 }
 0x27e   :  { %3075 = vmatprep.subr.bf16.mxu0 %v3281_v44  ;;  %3074 = vmatpush3.bf16.msra.mxu1 %v3410_v59 }
 0x27f   :  { %3081 = vmatprep.subr.bf16.mxu1 %v3281_v44 }
 0x280   :  { %2798 = vmatmul.mubr.msk.f32.vlgmr.msra.gmra.mrb[8].mxu0 %vm422_vm9, %v3489_v50 }
 0x281   :  { %3077 = vmatpush3.bf16.msra.mxu0 %v3370_v49  ;;  %2819 = vmatprep.mubr.msk.f32.mxu0 %vm3282_vm8, %v3280_v26 }
 0x282   :  { %3078 = vmatprep.subr.bf16.mxu0 %v3281_v44 }
 0x285   :  { %3080 = vmatpush3.bf16.msra.mxu0 %v3394_v55 }
 0x286   :  { %3087 = vmatprep.subr.bf16.mxu0 %v3281_v44 }
 0x34b   :  { %v730_v51 = vpop.f32.mrb[6].mxu0  ;;  %v800_v52 = vpop.f32.mrb[8].mxu1 }
 0x34c   :  { %v805_v53 = vrot.slane %v730_v51, 6  ;;  %v2777_v54 = vpop.f32.mrb[7].mxu0  ;;  %v2788_v57 = vpop.f32.mrb[9].mxu1  ;;  %v815_v58 = vrot.slane %v800_v52, 6 }
 0x34e   :  { %v807_v60 = vadd.f32 %v805_v53, %v3475_v21  ;;  %v817_v63 = vadd.f32 %v815_v58, %v3477_v22 }
 0x350   :  { %v2508_v61 = vmul.f32 -1.442695, %v807_v60  ;;  %v2509_v4 = vmul.f32 -1.442695, %v817_v63 }
 0x352   :  { %3207 = vpow2.f32 %v2508_v61 }
 0x353   :  { %v890_v0 = vpop.f32.mrb[8].mxu0  ;;  %3209 = vpow2.f32 %v2509_v4 }
 0x354   :  { %v2799_v3 = vpop.f32.mrb[9].mxu0  ;;  %v891_v9 = vadd.f32 %v890_v0, %v3483_v35 }
 0x356   :  { %v895_v13 = vrot.slane %v891_v9, 6 }
 0x35c   :  { %v3208_v6 = vpop.eup %3207 }
 0x35d   :  { %v811_v7 = vadd.f32 1.0, %v3208_v6  ;;  %v3210_v8 = vpop.eup %3209 }
 0x35e   :  { %v821_v10 = vadd.f32 1.0, %v3210_v8 }
 0x35f   :  { %3211 = vrcp.f32 %v811_v7 }
 0x360   :  { %3213 = vrcp.f32 %v821_v10 }
 0x369   :  { %v3212_v14 = vpop.eup %3211 }
 0x36a   :  { %v897_v15 = vmul.f32 %v3212_v14, %v895_v13  ;;  %v3214_v18 = vpop.eup %3213 }
 0x36b   :  { %v900_v19 = vsub.f32 1.0, %v3214_v18  ;;  %v904_v24 = vmul.f32 %v3214_v18, %v902_v20 }
 0x36c   :  { %v898_v16 = vadd.f32 %v897_v15, %v3486_v40 }
 0x36e   :  { %3215 = vtanh.f32 %v898_v16 }
 0x378   :  { %v3216_v23 = vpop.eup %3215 }
 0x379   :  { %v901_v25 = vmul.f32 %v3216_v23, %v900_v19 }
 0x37b   :  { %v905_v27 = vadd.f32 %v904_v24, %v901_v25 }
 0x37d   :  { %v907_v28 = vrot.slane %v905_v27, 2  ;;  %v1148_v53 = vrot.slane %v905_v27, 6  ;;  %v2372_v4 = vsel %vm2371_vm10, %v3489_v50, %v905_v27 }
 0x37f   :  { %2809 = vmatmul.mubr.msk.f32.vlgmr.msra.gmra.mrb[10].mxu1 %vm422_vm9, %v907_v28  ;;  %2820 = vmatmul.mubr.msk.f32.vlgmr.msra.gmra.mrb[10].mxu0 %vm422_vm9, %v907_v28 }
 0x380   :  { %3083 = vmatpush3.bf16.msra.mxu1 %v3424_v62  ;;  %2830 = vmatprep.mubr.msk.f32.mxu1 %vm3282_vm8, %v3280_v26 }
 0x381   :  { %3084 = vmatprep.subr.bf16.mxu1 %v3281_v44  ;;  %3089 = vmatpush3.bf16.msra.mxu0 %v3396_v56 }
 0x382   :  { %3090 = vmatprep.subr.bf16.mxu0 %v3281_v44  ;;  %2841 = vmatprep.mubr.msk.f32.mxu0 %vm3282_vm8, %v3280_v26 }
 0x384   :  { %3086 = vmatpush3.bf16.msra.mxu1 %v3439_v1 }
 0x385   :  { %3093 = vmatprep.subr.bf16.mxu1 %v3281_v44  ;;  %3092 = vmatpush3.bf16.msra.mxu0 %v3410_v59 }
 0x386   :  { %3099 = vmatprep.subr.bf16.mxu0 %v3281_v44 }
 0x387   :  { %2831 = vmatmul.mubr.msk.f32.vlgmr.msra.gmra.mrb[12].mxu1 %vm422_vm9, %v907_v28 }
 0x388   :  { %3095 = vmatpush3.bf16.msra.mxu1 %v3370_v49  ;;  %2852 = vmatprep.mubr.msk.f32.mxu1 %vm3282_vm8, %v3280_v26 }
 0x389   :  { %3096 = vmatprep.subr.bf16.mxu1 %v3281_v44 }
 0x38c   :  { %3098 = vmatpush3.bf16.msra.mxu1 %v3394_v55 }
 0x38d   :  { %3105 = vmatprep.subr.bf16.mxu1 %v3281_v44 }
 0x452   :  { %v976_v29 = vpop.f32.mrb[10].mxu1  ;;  %v1046_v30 = vpop.f32.mrb[10].mxu0 }
 0x453   :  { %v1051_v31 = vrot.slane %v976_v29, 4  ;;  %v1061_v32 = vrot.slane %v1046_v30, 4  ;;  %v2810_v33 = vpop.f32.mrb[11].mxu1  ;;  %v2821_v34 = vpop.f32.mrb[11].mxu0 }
 0x455   :  { %v1053_v36 = vadd.f32 %v1051_v31, %v3475_v21  ;;  %v1063_v37 = vadd.f32 %v1061_v32, %v3477_v22 }
 0x457   :  { %v2513_v38 = vmul.f32 -1.442695, %v1053_v36  ;;  %v2514_v39 = vmul.f32 -1.442695, %v1063_v37 }
 0x459   :  { %3217 = vpow2.f32 %v2513_v38 }
 0x45a   :  { %3219 = vpow2.f32 %v2514_v39  ;;  %v1136_v41 = vpop.f32.mrb[12].mxu1 }
 0x45b   :  { %v2832_v42 = vpop.f32.mrb[13].mxu1  ;;  %v1137_v48 = vadd.f32 %v1136_v41, %v3483_v35 }
 0x45d   :  { %v1141_v51 = vrot.slane %v1137_v48, 4 }
 0x463   :  { %v3218_v43 = vpop.eup %3217 }
 0x464   :  { %v3220_v45 = vpop.eup %3219  ;;  %v1057_v46 = vadd.f32 1.0, %v3218_v43 }
 0x465   :  { %v1067_v47 = vadd.f32 1.0, %v3220_v45 }
 0x466   :  { %3221 = vrcp.f32 %v1057_v46 }
 0x467   :  { %3223 = vrcp.f32 %v1067_v47 }
 0x470   :  { %v3222_v52 = vpop.eup %3221 }
 0x471   :  { %v3224_v54 = vpop.eup %3223  ;;  %v1143_v57 = vmul.f32 %v3222_v52, %v1141_v51 }
 0x472   :  { %v1150_v58 = vmul.f32 %v3224_v54, %v1148_v53  ;;  %v1146_v61 = vsub.f32 1.0, %v3224_v54 }
 0x473   :  { %v1144_v60 = vadd.f32 %v1143_v57, %v3486_v40 }
 0x475   :  { %3225 = vtanh.f32 %v1144_v60 }
 0x47f   :  { %v3226_v63 = vpop.eup %3225 }
 0x480   :  { %v1147_v0 = vmul.f32 %v3226_v63, %v1146_v61 }
 0x482   :  { %v1151_v3 = vadd.f32 %v1150_v58, %v1147_v0 }
 0x484   :  { %v1153_v6 = vrot.slane %v1151_v3, 4  ;;  %v2374_v7 = vsel %vm2373_vm11, %v2372_v4, %v1151_v3  ;;  %v1394_v32 = vrot.slane %v1151_v3, 6 }
 0x486   :  { %2842 = vmatmul.mubr.msk.f32.vlgmr.msra.gmra.mrb[12].mxu0 %vm422_vm9, %v1153_v6  ;;  %2853 = vmatmul.mubr.msk.f32.vlgmr.msra.gmra.mrb[14].mxu1 %vm422_vm9, %v1153_v6 }
 0x487   :  { %3101 = vmatpush3.bf16.msra.mxu0 %v3424_v62  ;;  %2863 = vmatprep.mubr.msk.f32.mxu0 %vm3282_vm8, %v3280_v26 }
 0x488   :  { %3102 = vmatprep.subr.bf16.mxu0 %v3281_v44  ;;  %3107 = vmatpush3.bf16.msra.mxu1 %v3396_v56 }
 0x489   :  { %3108 = vmatprep.subr.bf16.mxu1 %v3281_v44  ;;  %2874 = vmatprep.mubr.msk.f32.mxu1 %vm3282_vm8, %v3280_v26 }
 0x48b   :  { %3104 = vmatpush3.bf16.msra.mxu0 %v3439_v1 }
 0x48c   :  { %3111 = vmatprep.subr.bf16.mxu0 %v3281_v44  ;;  %3110 = vmatpush3.bf16.msra.mxu1 %v3410_v59 }
 0x48d   :  { %3117 = vmatprep.subr.bf16.mxu1 %v3281_v44 }
 0x48e   :  { %2864 = vmatmul.mubr.msk.f32.vlgmr.msra.gmra.mrb[14].mxu0 %vm422_vm9, %v1153_v6 }
 0x48f   :  { %3113 = vmatpush3.bf16.msra.mxu0 %v3370_v49  ;;  %2885 = vmatprep.mubr.msk.f32.mxu0 %vm3282_vm8, %v3280_v26 }
 0x490   :  { %3114 = vmatprep.subr.bf16.mxu0 %v3281_v44 }
 0x493   :  { %3116 = vmatpush3.bf16.msra.mxu0 %v3394_v55 }
 0x494   :  { %3123 = vmatprep.subr.bf16.mxu0 %v3281_v44 }
 0x559   :  { %v1222_v50 = vpop.f32.mrb[12].mxu0  ;;  %v1292_v8 = vpop.f32.mrb[14].mxu1 }
 0x55a   :  { %v1297_v9 = vrot.slane %v1222_v50, 2  ;;  %v1307_v10 = vrot.slane %v1292_v8, 2  ;;  %v2843_v13 = vpop.f32.mrb[13].mxu0  ;;  %v2854_v14 = vpop.f32.mrb[15].mxu1 }
 0x55c   :  { %v1299_v15 = vadd.f32 %v1297_v9, %v3475_v21  ;;  %v1309_v16 = vadd.f32 %v1307_v10, %v3477_v22 }
 0x55e   :  { %v2518_v18 = vmul.f32 -1.442695, %v1299_v15  ;;  %v2519_v19 = vmul.f32 -1.442695, %v1309_v16 }
 0x560   :  { %3227 = vpow2.f32 %v2518_v18 }
 0x561   :  { %3229 = vpow2.f32 %v2519_v19  ;;  %v1382_v20 = vpop.f32.mrb[14].mxu0 }
 0x562   :  { %v2865_v23 = vpop.f32.mrb[15].mxu0  ;;  %v1383_v29 = vadd.f32 %v1382_v20, %v3483_v35 }
 0x564   :  { %v1387_v30 = vrot.slane %v1383_v29, 2 }
 0x56a   :  { %v3228_v24 = vpop.eup %3227 }
 0x56b   :  { %v3230_v25 = vpop.eup %3229  ;;  %v1303_v27 = vadd.f32 1.0, %v3228_v24 }
 0x56c   :  { %v1313_v28 = vadd.f32 1.0, %v3230_v25 }
 0x56d   :  { %3231 = vrcp.f32 %v1303_v27 }
 0x56e   :  { %3233 = vrcp.f32 %v1313_v28 }
 0x577   :  { %v3232_v31 = vpop.eup %3231 }
 0x578   :  { %v3234_v21 = vpop.eup %3233  ;;  %v1389_v33 = vmul.f32 %v3232_v31, %v1387_v30 }
 0x579   :  { %v1396_v22 = vmul.f32 %v3234_v21, %v1394_v32  ;;  %v1392_v36 = vsub.f32 1.0, %v3234_v21 }
 0x57a   :  { %v1390_v34 = vadd.f32 %v1389_v33, %v3486_v40 }
 0x57c   :  { %3235 = vtanh.f32 %v1390_v34 }
 0x586   :  { %v3236_v37 = vpop.eup %3235 }
 0x587   :  { %v1393_v38 = vmul.f32 %v3236_v37, %v1392_v36 }
 0x589   :  { %v1397_v39 = vadd.f32 %v1396_v22, %v1393_v38 }
 0x58b   :  { %v1399_v41 = vrot.slane %v1397_v39, 6  ;;  %v3574_v42 = vsel %vm2375_vm12, %v2374_v7, %v1397_v39 }
 0x58d   :  { %2875 = vmatmul.mubr.msk.f32.vlgmr.msra.gmra.mrb[16].mxu1 %vm422_vm9, %v1399_v41  ;;  %2886 = vmatmul.mubr.msk.f32.vlgmr.msra.gmra.mrb[16].mxu0 %vm422_vm9, %v1399_v41 }
 0x58e   :  { %3119 = vmatpush3.bf16.msra.mxu1 %v3424_v62  ;;  %2896 = vmatprep.mubr.msk.f32.mxu1 %vm3282_vm8, %v3280_v26 }
 0x58f   :  { %3120 = vmatprep.subr.bf16.mxu1 %v3281_v44  ;;  %3125 = vmatpush3.bf16.msra.mxu0 %v3396_v56 }
 0x590   :  { %3126 = vmatprep.subr.bf16.mxu0 %v3281_v44  ;;  %2907 = vmatprep.mubr.msk.f32.mxu0 %vm3282_vm8, %v3280_v26 }
 0x592   :  { %3122 = vmatpush3.bf16.msra.mxu1 %v3439_v1 }
 0x593   :  { %3129 = vmatprep.subr.bf16.mxu1 %v3281_v44  ;;  %3128 = vmatpush3.bf16.msra.mxu0 %v3410_v59 }
 0x594   :  { %3135 = vmatprep.subr.bf16.mxu0 %v3281_v44 }
 0x595   :  { %2897 = vmatmul.mubr.msk.f32.vlgmr.msra.gmra.mrb[18].mxu1 %vm422_vm9, %v1399_v41 }
 0x596   :  { %3131 = vmatpush3.bf16.msra.mxu1 %v3370_v49  ;;  %2918 = vmatprep.mubr.msk.f32.mxu1 %vm3282_vm8, %v3280_v26 }
 0x597   :  { %3132 = vmatprep.subr.bf16.mxu1 %v3281_v44 }
 0x59a   :  { %3134 = vmatpush3.bf16.msra.mxu1 %v3394_v55 }
 0x59b   :  { %3141 = vmatprep.subr.bf16.mxu1 %v3281_v44 }
 0x660   :  { %v1468_v40 = vpop.f32.mrb[16].mxu1  ;;  %v1538_v43 = vpop.f32.mrb[16].mxu0 }
 0x661   :  { %v1542_v45 = vadd.f32 %v1468_v40, %v3468_v11  ;;  %v2876_v46 = vpop.f32.mrb[17].mxu1  ;;  %v2887_v47 = vpop.f32.mrb[17].mxu0  ;;  %v1549_v51 = vadd.f32 %v1538_v43, %v3473_v17 }
 0x663   :  { %v2523_v48 = vmul.f32 -1.442695, %v1542_v45  ;;  %v2524_v52 = vmul.f32 -1.442695, %v1549_v51 }
 0x665   :  { %3237 = vpow2.f32 %v2523_v48 }
 0x666   :  { %3239 = vpow2.f32 %v2524_v52 }
 0x668   :  { %v1622_v53 = vpop.f32.mrb[18].mxu1 }
 0x669   :  { %v2898_v54 = vpop.f32.mrb[19].mxu1  ;;  %v1623_v63 = vadd.f32 %v1622_v53, %v3483_v35 }
 0x66f   :  { %v3238_v57 = vpop.eup %3237 }
 0x670   :  { %v1546_v58 = vadd.f32 1.0, %v3238_v57  ;;  %v3240_v60 = vpop.eup %3239 }
 0x671   :  { %v1553_v61 = vadd.f32 1.0, %v3240_v60 }
 0x672   :  { %3241 = vrcp.f32 %v1546_v58 }
 0x673   :  { %3243 = vrcp.f32 %v1553_v61 }
 0x67c   :  { %v3242_v0 = vpop.eup %3241 }
 0x67d   :  { %v1626_v3 = vmul.f32 %v3242_v0, %v1623_v63  ;;  %v3244_v6 = vpop.eup %3243 }
 0x67e   :  { %v1629_v7 = vsub.f32 1.0, %v3244_v6  ;;  %v1632_v9 = vmul.f32 %v3244_v6, %v1399_v41 }
 0x67f   :  { %v1627_v4 = vadd.f32 %v1626_v3, %v3470_v12 }
 0x681   :  { %3245 = vtanh.f32 %v1627_v4 }
 0x68b   :  { %v3246_v50 = vpop.eup %3245 }
 0x68c   :  { %v1630_v8 = vmul.f32 %v3246_v50, %v1629_v7 }
 0x68e   :  { %v3601_v10 = vadd.f32 %v1632_v9, %v1630_v8 }
 0x690   :  { %2908 = vmatmul.mubr.msk.f32.vlgmr.msra.gmra.mrb[18].mxu0 %vm422_vm9, %v3601_v10  ;;  %2919 = vmatmul.mubr.msk.f32.vlgmr.msra.gmra.mrb[20].mxu1 %vm422_vm9, %v3601_v10  ;;  %v1875_v39 = vrot.slane %v3601_v10, 6 }
 0x691   :  { %3137 = vmatpush3.bf16.msra.mxu0 %v3424_v62  ;;  %2929 = vmatprep.mubr.msk.f32.mxu0 %vm3282_vm8, %v3280_v26 }
 0x692   :  { %3138 = vmatprep.subr.bf16.mxu0 %v3281_v44  ;;  %3143 = vmatpush3.bf16.msra.mxu1 %v3396_v56 }
 0x693   :  { %3144 = vmatprep.subr.bf16.mxu1 %v3281_v44  ;;  %2940 = vmatprep.mubr.msk.f32.mxu1 %vm3282_vm8, %v3280_v26 }
 0x695   :  { %3140 = vmatpush3.bf16.msra.mxu0 %v3439_v1 }
 0x696   :  { %3147 = vmatprep.subr.bf16.mxu0 %v3281_v44  ;;  %3146 = vmatpush3.bf16.msra.mxu1 %v3410_v59 }
 0x697   :  { %3153 = vmatprep.subr.bf16.mxu1 %v3281_v44 }
 0x698   :  { %2930 = vmatmul.mubr.msk.f32.vlgmr.msra.gmra.mrb[20].mxu0 %vm422_vm9, %v3601_v10 }
 0x699   :  { %3149 = vmatpush3.bf16.msra.mxu0 %v3370_v49  ;;  %2951 = vmatprep.mubr.msk.f32.mxu0 %vm3282_vm8, %v3280_v26 }
 0x69a   :  { %3150 = vmatprep.subr.bf16.mxu0 %v3281_v44 }
 0x69d   :  { %3152 = vmatpush3.bf16.msra.mxu0 %v3394_v55 }
 0x69e   :  { %3159 = vmatprep.subr.bf16.mxu0 %v3281_v44 }
 0x763   :  { %v1703_v13 = vpop.f32.mrb[18].mxu0  ;;  %v1773_v14 = vpop.f32.mrb[20].mxu1 }
 0x764   :  { %v1778_v15 = vrot.slane %v1703_v13, 6  ;;  %v2909_v16 = vpop.f32.mrb[19].mxu0  ;;  %v2920_v18 = vpop.f32.mrb[21].mxu1  ;;  %v1788_v19 = vrot.slane %v1773_v14, 6 }
 0x766   :  { %v1780_v20 = vadd.f32 %v1778_v15, %v3468_v11  ;;  %v1790_v24 = vadd.f32 %v1788_v19, %v3473_v17 }
 0x768   :  { %v2528_v23 = vmul.f32 -1.442695, %v1780_v20  ;;  %v2529_v28 = vmul.f32 -1.442695, %v1790_v24 }
 0x76a   :  { %3247 = vpow2.f32 %v2528_v23 }
 0x76b   :  { %v1863_v25 = vpop.f32.mrb[20].mxu0  ;;  %3249 = vpow2.f32 %v2529_v28 }
 0x76c   :  { %v2931_v27 = vpop.f32.mrb[21].mxu0  ;;  %v1864_v32 = vadd.f32 %v1863_v25, %v3483_v35 }
 0x76e   :  { %v1868_v33 = vrot.slane %v1864_v32, 6 }
 0x774   :  { %v3248_v29 = vpop.eup %3247 }
 0x775   :  { %v1784_v30 = vadd.f32 1.0, %v3248_v29  ;;  %v3250_v31 = vpop.eup %3249 }
 0x776   :  { %v1794_v21 = vadd.f32 1.0, %v3250_v31 }
 0x777   :  { %3251 = vrcp.f32 %v1784_v30 }
 0x778   :  { %3253 = vrcp.f32 %v1794_v21 }
 0x781   :  { %v3252_v22 = vpop.eup %3251 }
 0x782   :  { %v1870_v34 = vmul.f32 %v3252_v22, %v1868_v33  ;;  %v3254_v37 = vpop.eup %3253 }
 0x783   :  { %v1873_v38 = vsub.f32 1.0, %v3254_v37  ;;  %v1877_v40 = vmul.f32 %v3254_v37, %v1875_v39 }
 0x784   :  { %v1871_v36 = vadd.f32 %v1870_v34, %v3470_v12 }
 0x786   :  { %3255 = vtanh.f32 %v1871_v36 }
 0x790   :  { %v3256_v41 = vpop.eup %3255 }
 0x791   :  { %v1874_v43 = vmul.f32 %v3256_v41, %v1873_v38 }
 0x793   :  { %v1878_v45 = vadd.f32 %v1877_v40, %v1874_v43 }
 0x795   :  { %v1880_v46 = vrot.slane %v1878_v45, 2  ;;  %v2121_v7 = vrot.slane %v1878_v45, 6  ;;  %v2377_v19 = vsel %vm2371_vm10, %v3601_v10, %v1878_v45  ;;  %v2494_v10 = vld [vmem:[%s3697_s2 + $0xa8] sm:$0xff] }
 0x797   :  { %2941 = vmatmul.mubr.msk.f32.vlgmr.msra.gmra.mrb[22].mxu1 %vm422_vm9, %v1880_v46  ;;  %2952 = vmatmul.mubr.msk.f32.vlgmr.msra.gmra.mrb[22].mxu0 %vm422_vm9, %v1880_v46 }
 0x798   :  { %3155 = vmatpush3.bf16.msra.mxu1 %v3424_v62  ;;  %2962 = vmatprep.mubr.msk.f32.mxu1 %vm3282_vm8, %v3280_v26 }
 0x799   :  { %3156 = vmatprep.subr.bf16.mxu1 %v3281_v44  ;;  %3161 = vmatpush3.bf16.msra.mxu0 %v3396_v56 }
 0x79a   :  { %3162 = vmatprep.subr.bf16.mxu0 %v3281_v44  ;;  %2973 = vmatprep.mubr.msk.f32.mxu0 %vm3282_vm8, %v3280_v26 }
 0x79c   :  { %3158 = vmatpush3.bf16.msra.mxu1 %v3439_v1 }
 0x79d   :  { %3165 = vmatprep.subr.bf16.mxu1 %v3281_v44  ;;  %3164 = vmatpush3.bf16.msra.mxu0 %v3410_v59 }
 0x79e   :  { %3171 = vmatprep.subr.bf16.mxu0 %v3281_v44 }
 0x79f   :  { %2963 = vmatmul.mubr.msk.f32.vlgmr.msra.gmra.mrb[24].mxu1 %vm422_vm9, %v1880_v46 }
 0x7a0   :  { %3167 = vmatpush3.bf16.msra.mxu1 %v3370_v49  ;;  %2984 = vmatprep.mubr.msk.f32.mxu1 %vm3282_vm8, %v3280_v26 }
 0x7a1   :  { %3168 = vmatprep.subr.bf16.mxu1 %v3281_v44 }
 0x7a4   :  { %3170 = vmatpush3.bf16.msra.mxu1 %v3394_v55 }
 0x86a   :  { %v1949_v56 = vpop.f32.mrb[22].mxu1  ;;  %v2019_v47 = vpop.f32.mrb[22].mxu0 }
 0x86b   :  { %v2024_v48 = vrot.slane %v1949_v56, 4  ;;  %v2034_v51 = vrot.slane %v2019_v47, 4  ;;  %v2942_v52 = vpop.f32.mrb[23].mxu1  ;;  %v2953_v53 = vpop.f32.mrb[23].mxu0 }
 0x86d   :  { %v2026_v59 = vadd.f32 %v2024_v48, %v3468_v11  ;;  %v2036_v54 = vadd.f32 %v2034_v51, %v3473_v17 }
 0x86f   :  { %v2533_v57 = vmul.f32 -1.442695, %v2026_v59  ;;  %v2534_v58 = vmul.f32 -1.442695, %v2036_v54  ;;  %v2382_v59 = vsub.s32 4, %v3456_v2 }
 0x871   :  { %3257 = vpow2.f32 %v2533_v57 }
 0x872   :  { %3259 = vpow2.f32 %v2534_v58  ;;  %v2109_v49 = vpop.f32.mrb[24].mxu1 }
 0x873   :  { %v2964_v60 = vpop.f32.mrb[25].mxu1  ;;  %v2110_v3 = vadd.f32 %v2109_v49, %v3483_v35 }
 0x875   :  { %v2114_v4 = vrot.slane %v2110_v3, 4 }
 0x87b   :  { %v3258_v61 = vpop.eup %3257 }
 0x87c   :  { %v3260_v63 = vpop.eup %3259  ;;  %v2030_v0 = vadd.f32 1.0, %v3258_v61 }
 0x87d   :  { %v2040_v55 = vadd.f32 1.0, %v3260_v63 }
 0x87e   :  { %3261 = vrcp.f32 %v2030_v0 }
 0x87f   :  { %3263 = vrcp.f32 %v2040_v55 }
 0x888   :  { %v3262_v6 = vpop.eup %3261 }
 0x889   :  { %v3264_v50 = vpop.eup %3263  ;;  %v2116_v8 = vmul.f32 %v3262_v6, %v2114_v4 }
 0x88a   :  { %v2123_v9 = vmul.f32 %v3264_v50, %v2121_v7  ;;  %v2119_v14 = vsub.f32 1.0, %v3264_v50 }
 0x88b   :  { %v2117_v13 = vadd.f32 %v2116_v8, %v3470_v12 }
 0x88d   :  { %3265 = vtanh.f32 %v2117_v13 }
 0x897   :  { %v3266_v15 = vpop.eup %3265 }
 0x898   :  { %v2120_v16 = vmul.f32 %v3266_v15, %v2119_v14 }
 0x89a   :  { %v2124_v18 = vadd.f32 %v2123_v9, %v2120_v16 }
 0x89c   :  { %v2126_v20 = vrot.slane %v2124_v18, 4  ;;  %v2378_v23 = vsel %vm2373_vm11, %v2377_v19, %v2124_v18  ;;  %v2367_v45 = vrot.slane %v2124_v18, 6 }
 0x89e   :  { %2974 = vmatmul.mubr.msk.f32.vlgmr.msra.gmra.mrb[24].mxu0 %vm422_vm9, %v2126_v20  ;;  %2985 = vmatmul.mubr.msk.f32.vlgmr.msra.gmra.mrb[26].mxu1 %vm422_vm9, %v2126_v20 }
 0x89f   :  { %3173 = vmatpush3.bf16.msra.mxu0 %v3424_v62  ;;  %3006 = vmatprep.mubr.msk.f32.mxu1 %vm422_vm9, %v3574_v42  ;;  %v2495_v62 = vld [vmem:[%s3697_s2 + $0xb0] sm:$0xff]  ;;  %v2496_v42 = vld [vmem:[%s3697_s2 + $0xb8] sm:$0xff] }
 0x8a0   :  { %3174 = vmatprep.subr.bf16.mxu0 %v3281_v44  ;;  %2995 = vmatprep.mubr.msk.f32.mxu0 %vm3282_vm8, %v3280_v26  ;;  %v3177_v44 = vpack.c.bf16 %v2495_v62, %v2494_v10  ;;  %v2497_v26 = vld [vmem:[%s3697_s2 + $0xc0] sm:$0xff] }
 0x8a2   :  { %3178 = vmatprep.subr.bf16.mxu1 %v3177_v44 }
 0x8a3   :  { %3176 = vmatpush3.bf16.msra.mxu0 %v3439_v1  ;;  %v3181_v1 = vpack.c.bf16 %v2497_v26, %v2496_v42  ;;  %3180 = vmatpush3.bf16.msra.mxu1 %v3177_v44 }
 0x8a5   :  { %3182 = vmatprep.subr.bf16.mxu1 %v3181_v1 }
 0x8a6   :  { %2996 = vmatmul.mubr.msk.f32.vlgmr.msra.gmra.mrb[26].mxu0 %vm422_vm9, %v2126_v20 }
 0x8a7   :  { %3184 = vmatpush3.bf16.msra.mxu1 %v3181_v1 }
 0x971   :  { %v2195_v24 = vpop.f32.mrb[24].mxu0  ;;  %v2265_v25 = vpop.f32.mrb[26].mxu1 }
 0x972   :  { %v2270_v27 = vrot.slane %v2195_v24, 2  ;;  %v2280_v28 = vrot.slane %v2265_v25, 2  ;;  %v2975_v29 = vpop.f32.mrb[25].mxu0  ;;  %v2986_v30 = vpop.f32.mrb[27].mxu1 }
 0x974   :  { %v2272_v31 = vadd.f32 %v2270_v27, %v3468_v11  ;;  %v2282_v32 = vadd.f32 %v2280_v28, %v3473_v17 }
 0x976   :  { %v2538_v21 = vmul.f32 -1.442695, %v2272_v31  ;;  %v2539_v33 = vmul.f32 -1.442695, %v2282_v32 }
 0x978   :  { %3267 = vpow2.f32 %v2538_v21 }
 0x979   :  { %3269 = vpow2.f32 %v2539_v33  ;;  %v2355_v22 = vpop.f32.mrb[26].mxu0 }
 0x97a   :  { %v2997_v34 = vpop.f32.mrb[27].mxu0  ;;  %v2356_v41 = vadd.f32 %v2355_v22, %v3483_v35  ;;  %v2383_v35 = vrot.slane %v3463_v5, %v2382_v59 }
 0x97c   :  { %v2360_v40 = vrot.slane %v2356_v41, 2 }
 0x982   :  { %v3268_v36 = vpop.eup %3267 }
 0x983   :  { %v3270_v37 = vpop.eup %3269  ;;  %v2276_v38 = vadd.f32 1.0, %v3268_v36 }
 0x984   :  { %v2286_v39 = vadd.f32 1.0, %v3270_v37 }
 0x985   :  { %3271 = vrcp.f32 %v2276_v38 }
 0x986   :  { %3273 = vrcp.f32 %v2286_v39 }
 0x98f   :  { %v3272_v43 = vpop.eup %3271 }
 0x990   :  { %v3274_v11 = vpop.eup %3273  ;;  %v2362_v46 = vmul.f32 %v3272_v43, %v2360_v40 }
 0x991   :  { %v2369_v17 = vmul.f32 %v3274_v11, %v2367_v45  ;;  %v2365_v47 = vsub.f32 1.0, %v3274_v11 }
 0x992   :  { %v2363_v56 = vadd.f32 %v2362_v46, %v3470_v12 }
 0x994   :  { %3275 = vtanh.f32 %v2363_v56 }
 0x99e   :  { %v3276_v48 = vpop.eup %3275 }
 0x99f   :  { %v2366_v51 = vmul.f32 %v3276_v48, %v2365_v47 }
 0x9a1   :  { %v2370_v52 = vadd.f32 %v2369_v17, %v2366_v51 }
 0x9a3   :  { %v2379_v53 = vsel %vm2375_vm12, %v2378_v23, %v2370_v52 }
 0x9a4   :  { %3007 = vmatmul.mubr.msk.f32.vlgmr.msra.gmra.mrb[28].mxu1 %vm422_vm9, %v2379_v53 }
 0xa77   :  { %v3008_v54 = vpop.f32.mrb[28].mxu1 }
 0xa78   :  { %v2462_v57 = vadd.f32 %v3008_v54, %v2383_v35  ;;  %v2456_v58 = vpop.f32.mrb[29].mxu1 }
 0xa79   :  { %v2457_v49 = vadd.f32 %v2456_v58, %v2383_v35 }
 0xa7a   :  { %2467 = vst.msk [vmem:[%s3699_s4 + $0x8] sm:$0xff] %vm2465_vm13, %v2462_v57 }
 0xa7b   :  { %2466 = vst.msk [vmem:[%s3699_s4] sm:$0xff] %vm2465_vm13, %v2457_v49 }

</bundles_post_ra>
